<compile_context>
chip_gen: v7x
topology: tpu7x:2x2x1
jax: 0.10.0
libtpu: 0.0.40
codegen_flags: <defaults>
</compile_context>

<pallas_src>
import jax
import jax.numpy as jnp
from jax.experimental import pallas as pl
from jax.experimental.pallas import tpu as pltpu


def _round_up(n, m):
    return ((n + m - 1) // m) * m


def _round_down(n, m):
    return (n // m) * m


def _min_value(dtype):
    dtype = jnp.dtype(dtype)
    if jnp.issubdtype(dtype, jnp.floating):
        return float("-inf")
    if jnp.issubdtype(dtype, jnp.integer):
        return int(jnp.iinfo(dtype).min)
    return False  # bool


def _tile_budget_bytes():
    """Generation-aware input-tile budget: 8 MiB on 64-MiB-VMEM parts (v7x),
    16 MiB on 128-MiB parts (v5e / v6e)."""
    vmem_cap = 128 << 20
    try:
        info = pltpu.get_tpu_info()
        cap = getattr(info, "vmem_capacity_bytes", None)
        if cap:
            vmem_cap = int(cap)
    except Exception:
        pass
    return (8 << 20) if vmem_cap <= (64 << 20) else (16 << 20)


def _rowmax_kernel_1d(x_ref, o_ref):
    # One contiguous (tr, L) slab per grid step: single cross-lane reduce.
    o_ref[...] = jnp.max(x_ref[...], axis=1, keepdims=True)


def _make_rowmax_kernel_2d(tl, L, fill_value):
    mask_tail = (L % tl) != 0

    def kernel(x_ref, o_ref, acc_ref):
        k = pl.program_id(1)

        @pl.when(k == 0)
        def _():
            acc_ref[...] = jnp.full(acc_ref.shape, fill_value, acc_ref.dtype)

        xv = x_ref[...]
        if mask_tail:
            # Mask the ragged lane tail of the last reduction block with the
            # dtype minimum (static no-op when L % tl == 0).
            lane = jax.lax.broadcasted_iota(jnp.int32, xv.shape, 1)
            valid = (k * tl + lane) < L
            xv = jnp.where(valid, xv, jnp.asarray(fill_value, dtype=xv.dtype))

        acc_ref[...] = jnp.maximum(acc_ref[...], jnp.max(xv, axis=1, keepdims=True))

        @pl.when(k == pl.num_programs(1) - 1)
        def _():
            o_ref[...] = acc_ref[...]

    return kernel


def fast_global_max_pooling(x, *, tile_budget_bytes=None):
    """out[b, c] = max over (h, w) of x[b, c, h, w]  — Pallas TPU kernel."""
    B, C, H, W = x.shape
    R = B * C
    L = H * W
    x2d = x.reshape(R, L)  # contiguous NCHW -> (R, L): free reshape
    itemsize = jnp.dtype(x.dtype).itemsize

    budget = tile_budget_bytes if tile_budget_bytes is not None else _tile_budget_bytes()
    budget = max(int(budget), 8 * 128 * itemsize)

    # VMEM footprint of one row inside a block: the input row is lane-padded to
    # a multiple of 128, plus the (tr, 1) output block also pads to 128 lanes.
    per_row_vmem = (_round_up(L, 128) + 128) * itemsize

    cost = pl.CostEstimate(
        flops=R * L,
        transcendentals=0,
        bytes_accessed=R * L * itemsize + R * itemsize,
    )

    if 8 * per_row_vmem <= budget:
        # --- 1-D path: full reduction extent per block (contiguous DMA) ---
        tl = L
        tr = min(_round_down(budget // per_row_vmem, 8), _round_up(R, 8))
        tr = max(tr, 8)
        # Keep >= 2 row blocks when R allows, so both v7x TensorCores get work.
        if R > 8 and pl.cdiv(R, tr) < 2:
            tr = max(8, _round_up(pl.cdiv(R, 2), 8))
        grid = (pl.cdiv(R, tr),)
        vmem_limit = int(max(32 << 20, 2 * tr * per_row_vmem + (8 << 20)))

        out2d = pl.pallas_call(
            _rowmax_kernel_1d,
            out_shape=jax.ShapeDtypeStruct((R, 1), x.dtype),
            grid_spec=pltpu.PrefetchScalarGridSpec(
                num_scalar_prefetch=0,
                grid=grid,
                in_specs=[pl.BlockSpec((tr, tl), lambda i: (i, 0))],
                out_specs=pl.BlockSpec((tr, 1), lambda i: (i, 0)),
            ),
            compiler_params=pltpu.CompilerParams(
                dimension_semantics=("parallel",),
                vmem_limit_bytes=vmem_limit,
            ),
            cost_estimate=cost,
        )(x2d)
    else:
        # --- 2-D path: H*W alone exceeds the tile budget, split the reduction
        # axis into 128-multiple lane tiles and mask the ragged tail. ---
        tl = min(_round_down(budget // (8 * itemsize), 128), _round_up(L, 128))
        tl = max(tl, 128)
        tr = min(max(8, _round_down(budget // (tl * itemsize), 8)), _round_up(R, 8))
        grid = (pl.cdiv(R, tr), pl.cdiv(L, tl))
        fill_value = _min_value(x.dtype)
        vmem_limit = int(max(32 << 20, 2 * tr * tl * itemsize + (8 << 20)))

        out2d = pl.pallas_call(
            _make_rowmax_kernel_2d(tl, L, fill_value),
            out_shape=jax.ShapeDtypeStruct((R, 1), x.dtype),
            grid_spec=pltpu.PrefetchScalarGridSpec(
                num_scalar_prefetch=0,
                grid=grid,
                in_specs=[pl.BlockSpec((tr, tl), lambda i, k: (i, k))],
                out_specs=pl.BlockSpec((tr, 1), lambda i, k: (i, 0)),
                scratch_shapes=[pltpu.VMEM((tr, 1), x.dtype)],
            ),
            compiler_params=pltpu.CompilerParams(
                dimension_semantics=("parallel", "arbitrary"),
                vmem_limit_bytes=vmem_limit,
            ),
            cost_estimate=cost,
        )(x2d)

    return out2d.reshape(B, C)


if __name__ == "__main__":
    key = jax.random.PRNGKey(0)
    # Small NCHW input: batch=2, channels=4, spatial=16x16.
    x = jax.random.normal(key, (2, 4, 16, 16), dtype=jnp.float32)

    y = jax.block_until_ready(fast_global_max_pooling(x))

    # Correctness vs pure-JAX reference (torch.amax(x, dim=(2, 3))).
    y_ref = jnp.max(x, axis=(2, 3))
    assert y.shape == (2, 4) and y.dtype == x.dtype
    assert jnp.array_equal(y, y_ref)

    # Also exercise the split-reduction (masked lane tail) path on a ragged
    # shape by forcing a tiny tile budget.
    x2 = jax.random.normal(jax.random.PRNGKey(1), (2, 3, 13, 17), dtype=jnp.float32)
    y2 = jax.block_until_ready(fast_global_max_pooling(x2, tile_budget_bytes=4096))
    assert jnp.array_equal(y2, jnp.max(x2, axis=(2, 3)))

    print("KERNEL_OK")
</pallas_src>

<mosaic_0001>
module attributes {stable_mosaic.version = 11 : i64} {
  func.func @_rowmax_kernel_1d(%arg0: i32, %arg1: memref<8x256xf32, #tpu.memory_space<vmem>>, %arg2: memref<8x1xf32, #tpu.memory_space<vmem>>) attributes {dimension_semantics = [#tpu.dimension_semantics<parallel>], iteration_bounds = array<i64: 1>, scalar_prefetch = 0 : i64, scratch_operands = 0 : i64, tpu.core_type = #tpu.core_type<tc>, window_params = [{transform_indices = @transform_0, window_bounds = array<i64: 8, 256>}, {transform_indices = @transform_1, window_bounds = array<i64: 8, 1>}]} {
    %c0 = arith.constant 0 : index
    %c0_0 = arith.constant 0 : index
    %0 = vector.load %arg1[%c0, %c0_0] : memref<8x256xf32, #tpu.memory_space<vmem>>, vector<8x256xf32>
    %cst = arith.constant dense<0xFF800000> : vector<8xf32>
    %1 = vector.multi_reduction <maximumf>, %0, %cst [1] : vector<8x256xf32> to vector<8xf32>
    %2 = vector.shape_cast %1 : vector<8xf32> to vector<8x1xf32>
    %c0_1 = arith.constant 0 : index
    %c0_2 = arith.constant 0 : index
    %3 = vector.load %arg2[%c0_1, %c0_2] : memref<8x1xf32, #tpu.memory_space<vmem>>, vector<8x1xf32>
    tpu.vector_store %arg2[%c0_1, %c0_2], %2 {strides = array<i32>} : memref<8x1xf32, #tpu.memory_space<vmem>>, vector<8x1xf32>,
    return
  }
  func.func @transform_0(%arg0: i32) -> (i32, i32) {
    %c0_i32 = arith.constant 0 : i32
    %c0_i32_0 = arith.constant 0 : i32
    return %arg0, %c0_i32 : i32, i32
  }
  func.func @transform_1(%arg0: i32) -> (i32, i32) {
    %c0_i32 = arith.constant 0 : i32
    %c0_i32_0 = arith.constant 0 : i32
    return %arg0, %c0_i32 : i32, i32
  }
}

</mosaic_0001>

<bundles_post_ra>
// kernel: tpu_custom_call.1
= control target key start
LH: loop header
LB: loop body
LE: loop exit
PB: predicated region body
PF: predicated region fallthrough
CT: control target
= control target key end

     0   :  { %6 = vsyncpa [#allocation3], 0  ;;  %s57_s6 = smov [#allocation2]   ;;  %s83_s0 = inlined_call_operand.hbm [shape: f32[8,256], index: 0, kind: input, shape index: {}]   ;;  %s84_s1 = inlined_call_operand.vmem [shape: f32[8,1], index: 1, kind: output, shape index: {}]  }
   0x1   :  { %s13_s7 = sshll.u32 %s57_s6, 4  ;;  %s33_s10 = scalar_lea.hbm %s83_s0, 256  ;;  %s14_s7 = int_to_ptr.vmem [resolvable:$true] %s13_s7 }
   0x2   :  { %p34_p0 = scmp.ne.s32.totalorder %s83_s0, %s33_s10  ;;  %p37_p1 = scmp.lt.u32.totalorder %s33_s10, %s83_s0 }
   0x4   :  { %p39_p2 = pnand %p37_p1, %p34_p0 }
   0x6   :  { %42 = shalt.err (!%p39_p2)
}
   0x7   :  { %s43_s15 = scalar_lea.vmem %s14_s7, 256  ;;  %p48_p4 = scmp.lt.s32.totalorder %s14_s7, %s14_s7 }
   0x8   :  { %p44_p3 = scmp.ne.s32.totalorder %s14_s7, %s43_s15  ;;  %p49_p5 = scmp.lt.s32.totalorder %s43_s15, %s43_s15 }
   0xa   :  { %p50_p6 = por %p49_p5, %p48_p4 }
   0xc   :  { %p51_p7 = pnand %p50_p6, %p44_p3 }
   0xe   :  { %54 = shalt.err (!%p51_p7)
}
   0xf   :  { %16 = dma.hbm_to_vmem [thread:$0]  %s83_s0, 256, %s14_s7, [#allocation3]  }
  0x10   :  { %55 = dma.done.wait [#allocation3], 256  }
  0x11   :  { %56 = vsyncadd [#allocation3], 4294967040  ;;  %v20_v0 = vld [vmem:[#allocation2] sm:$0xff]  ;;  %v21_v1 = vld [vmem:[#allocation2 + $0x8] sm:$0xff]  ;;  %vm25_vm0 = vcmask 7168  }
  0x12   :  { %v22_v2 = vmax.f32 %v20_v0, %v21_v1 }
  0x14   :  { %23 = vmax.xlane.f32.xlu0 %v22_v2 }
  0xa1   :  { %v24_v3 = vpop.xlane.xlu0 %23 }
  0xa2   :  { %26 = vst.msk [vmem:[%s84_s1] sm:$0xff] %vm25_vm0, %v24_v3 }
  0xa3   :  { %31 = vsyncpa [#allocation3], 1 }

</bundles_post_ra>
